<compile_context>
chip_gen: v7x
topology: tpu7x:2x2x1
jax: 0.10.0
libtpu: 0.0.40
codegen_flags: <defaults>
</compile_context>

<pallas_src>
import numpy as np
import jax
import jax.numpy as jnp
from jax.experimental import pallas as pl
from jax.experimental.pallas import tpu as pltpu


def _basic_block_kernel(x_ref, w1_ref, b1_ref, w2_ref, b2_ref, o_ref, xpad_ref):
    # Per grid step (Nb images), with WC = W*C:
    #   x_ref   : (Nb, H, WC)     f32   lane-dense input block (also the residual)
    #   w1_ref  : (3*WC, WC)      bf16  conv1 block-Toeplitz weights (BN1 folded)
    #   b1_ref  : (1, WC)         f32   folded BN1 bias, tiled along W
    #   w2_ref  : (3*WC, WC)      bf16  conv2 block-Toeplitz weights (BN2 folded)
    #   b2_ref  : (1, WC)         f32   folded BN2 bias, tiled along W
    #   o_ref   : (Nb, H, WC)     f32   lane-dense output block
    #   xpad_ref: (Nb, H+2, WC)   bf16  scratch: H-halo-padded conv input (reused)
    nb, H, WC = o_ref.shape
    M = nb * H

    # Zero the 1-row top/bottom halo (two thin, full-lane stores).  Done every
    # grid step so the kernel stays megacore-safe; the interior is overwritten.
    zrow = jnp.zeros((nb, 1, WC), jnp.bfloat16)
    xpad_ref[:, 0:1, :] = zrow
    xpad_ref[:, H + 1:H + 2, :] = zrow

    def conv_bn_relu(img_bf16, w_ref, b_ref):
        # img_bf16: (Nb, H, WC) bf16.  The width taps and left/right zero
        # padding live in the block-Toeplitz weights, so the conv is just 3
        # dense MXU matmuls (one per dy row shift) over direct ref-slices of
        # the shared padded slab — no lane-masked ops anywhere.
        xpad_ref[:, 1:H + 1, :] = img_bf16
        acc = None
        for dy in range(3):
            slab = xpad_ref[:, dy:dy + H, :].reshape(M, WC)      # dense load
            part = jnp.dot(slab, w_ref[dy * WC:(dy + 1) * WC, :],
                           preferred_element_type=jnp.float32)   # MXU, f32 acc
            acc = part if acc is None else acc + part
        return jnp.maximum(acc + b_ref[...], 0.0)                # (M, WC) f32

    h1 = conv_bn_relu(x_ref[...].astype(jnp.bfloat16), w1_ref, b1_ref)
    h2 = conv_bn_relu(h1.astype(jnp.bfloat16).reshape(nb, H, WC), w2_ref, b2_ref)

    # Residual: out = x + layers(x).  Re-read x_ref (cheap VMEM load) instead
    # of keeping the f32 value live across both convs (frees vregs).
    o_ref[...] = x_ref[...] + h2.reshape(nb, H, WC)


@jax.jit
def basic_block_nhwc(x_nhwc, w1t, b1r, w2t, b2r):
    """x_nhwc: (N, H, W, C) f32, channels-last.
    w1t/w2t: (3*W*C, W*C) bf16 block-Toeplitz conv weights, BN scale folded.
    b1r/b2r: (1, W*C) f32 folded BN bias, tiled along W."""
    N, H, W, C = x_nhwc.shape
    WC = W * C                           # lane-dense when a multiple of 128
    x_flat = x_nhwc.reshape(N, H, WC)    # free reshape — no transpose, no copy

    if N % 4 == 0:
        nb = 4
    elif N % 2 == 0:
        nb = 2
    else:
        nb = 1

    out_flat = pl.pallas_call(
        _basic_block_kernel,
        out_shape=jax.ShapeDtypeStruct((N, H, WC), x_flat.dtype),
        grid_spec=pltpu.PrefetchScalarGridSpec(
            num_scalar_prefetch=0,
            grid=(N // nb,),
            in_specs=[
                pl.BlockSpec((nb, H, WC), lambda n: (n, 0, 0)),
                pl.BlockSpec((3 * WC, WC), lambda n: (0, 0)),
                pl.BlockSpec((1, WC), lambda n: (0, 0)),
                pl.BlockSpec((3 * WC, WC), lambda n: (0, 0)),
                pl.BlockSpec((1, WC), lambda n: (0, 0)),
            ],
            out_specs=pl.BlockSpec((nb, H, WC), lambda n: (n, 0, 0)),
            scratch_shapes=[
                pltpu.VMEM((nb, H + 2, WC), jnp.bfloat16),  # shared padded slab
            ],
        ),
        compiler_params=pltpu.CompilerParams(
            dimension_semantics=("parallel",),
            # Generation-aware: well under v7x's 64 MiB physical per-core VMEM;
            # the actual per-step footprint here is < 1 MiB.
            vmem_limit_bytes=32 * 1024 * 1024),
    )(x_flat, w1t, b1r, w2t, b2r)

    return out_flat.reshape(N, H, W, C)


# ----------------------------- parameter prep ------------------------------

def _fold_bn_into_conv(w, conv_bias, gamma, beta, mean, var, eps=1e-5):
    """BN(conv(x) + b) in inference mode == conv(x; w*scale) + bias."""
    scale = gamma / jnp.sqrt(var + eps)              # (Cout,)
    w_folded = w * scale                             # broadcast over HWIO last dim
    bias = beta + scale * (conv_bias - mean)
    return w_folded, bias


def _toeplitz_weights(w_hwio, W):
    """Fold the 3 width taps + left/right zero padding of a 3x3 'SAME' conv
    into a block-Toeplitz matrix along W, one (W*Cin, W*Cout) block per dy.

    T[dy][u*Cin + ci, w*Cout + co] = w_hwio[dy, u - w + 1, ci, co] for |u-w| <= 1.
    Returns (3*W*Cin, W*Cout) (dy blocks stacked along rows)."""
    w = np.asarray(w_hwio, dtype=np.float32)         # (3, 3, Cin, Cout)
    cin, cout = w.shape[2], w.shape[3]
    t = np.zeros((3, W, cin, W, cout), np.float32)
    for dy in range(3):
        for dx in range(3):
            for ww in range(W):
                u = ww + dx - 1                      # input column feeding output col ww
                if 0 <= u < W:
                    t[dy, u, :, ww, :] = w[dy, dx]
    return jnp.asarray(t.reshape(3 * W * cin, W * cout))


def _make_params(key, cin, cout):
    ks = jax.random.split(key, 10)
    w1 = jax.random.normal(ks[0], (3, 3, cin, cout), jnp.float32) * 0.1
    b1 = jax.random.normal(ks[1], (cout,), jnp.float32) * 0.1
    g1 = 1.0 + 0.1 * jax.random.normal(ks[2], (cout,), jnp.float32)
    be1 = 0.1 * jax.random.normal(ks[3], (cout,), jnp.float32)
    m1 = 0.1 * jax.random.normal(ks[4], (cout,), jnp.float32)
    v1 = jnp.abs(jax.random.normal(ks[5], (cout,), jnp.float32)) + 0.5

    w2 = jax.random.normal(ks[6], (3, 3, cout, cout), jnp.float32) * 0.1
    b2 = jax.random.normal(ks[7], (cout,), jnp.float32) * 0.1
    g2 = 1.0 + 0.1 * jax.random.normal(ks[8], (cout,), jnp.float32)
    be2 = 0.1 * jax.random.normal(ks[9], (cout,), jnp.float32)
    m2 = jnp.zeros((cout,), jnp.float32)
    v2 = jnp.ones((cout,), jnp.float32)

    w1f, bb1 = _fold_bn_into_conv(w1, b1, g1, be1, m1, v1)
    w2f, bb2 = _fold_bn_into_conv(w2, b2, g2, be2, m2, v2)
    return w1f, bb1, w2f, bb2


def _reference_nhwc(x, w1f, b1, w2f, b2):
    """Pure-JAX reference with the same folded-BN, bf16-operand / f32-accum math."""
    dn = ("NHWC", "HWIO", "NHWC")

    def conv(a, w):
        return jax.lax.conv_general_dilated(
            a.astype(jnp.bfloat16), w.astype(jnp.bfloat16), (1, 1), "SAME",
            dimension_numbers=dn, preferred_element_type=jnp.float32)

    h = jnp.maximum(conv(x, w1f) + b1, 0.0)
    h2 = jnp.maximum(conv(h, w2f) + b2, 0.0)
    return x + h2                                     # ReLU is inside `layers`


if __name__ == "__main__":
    key = jax.random.PRNGKey(0)
    k_x, k_p = jax.random.split(key)

    # Residual add requires in_channels == out_channels; W*C = 128 -> lane-dense.
    # (NHWC view of the PyTorch module's (N, C, H, W) input.)
    N, H, W, C = 8, 16, 16, 8
    x = jax.random.normal(k_x, (N, H, W, C), jnp.float32)
    w1f, b1, w2f, b2 = _make_params(k_p, C, C)

    # Kernel-layout params: block-Toeplitz (3*W*C, W*C) bf16 weights with BN
    # scale and 'SAME' width padding folded in, plus W-tiled bias rows.
    w1t = _toeplitz_weights(w1f, W).astype(jnp.bfloat16)
    w2t = _toeplitz_weights(w2f, W).astype(jnp.bfloat16)
    b1r = jnp.tile(b1, W).reshape(1, W * C)
    b2r = jnp.tile(b2, W).reshape(1, W * C)

    out = jax.block_until_ready(basic_block_nhwc(x, w1t, b1r, w2t, b2r))
    ref = jax.block_until_ready(_reference_nhwc(x, w1f, b1, w2f, b2))

    assert out.shape == (N, H, W, C)
    max_err = jnp.max(jnp.abs(out - ref))
    assert jnp.allclose(out, ref, atol=2e-2, rtol=2e-2), f"max abs err = {max_err}"

    print("KERNEL_OK")
</pallas_src>

<mosaic_0001>
module attributes {stable_mosaic.version = 11 : i64} {
  func.func @_basic_block_kernel(%arg0: i32, %arg1: memref<4x16x128xf32, #tpu.memory_space<vmem>>, %arg2: memref<384x128xbf16, #tpu.memory_space<vmem>>, %arg3: memref<1x128xf32, #tpu.memory_space<vmem>>, %arg4: memref<384x128xbf16, #tpu.memory_space<vmem>>, %arg5: memref<1x128xf32, #tpu.memory_space<vmem>>, %arg6: memref<4x16x128xf32, #tpu.memory_space<vmem>>, %arg7: memref<4x18x128xbf16, #tpu.memory_space<vmem>>) attributes {dimension_semantics = [#tpu.dimension_semantics<parallel>], iteration_bounds = array<i64: 2>, scalar_prefetch = 0 : i64, scratch_operands = 1 : i64, tpu.core_type = #tpu.core_type<tc>, window_params = [{transform_indices = @transform_0, window_bounds = array<i64: 4, 16, 128>}, {pipeline_mode = #tpu.pipeline_mode<synchronous>, transform_indices = @transform_1, window_bounds = array<i64: 384, 128>}, {pipeline_mode = #tpu.pipeline_mode<synchronous>, transform_indices = @transform_2, window_bounds = array<i64: 1, 128>}, {pipeline_mode = #tpu.pipeline_mode<synchronous>, transform_indices = @transform_3, window_bounds = array<i64: 384, 128>}, {pipeline_mode = #tpu.pipeline_mode<synchronous>, transform_indices = @transform_4, window_bounds = array<i64: 1, 128>}, {transform_indices = @transform_5, window_bounds = array<i64: 4, 16, 128>}]} {
    %cst = arith.constant 0.000000e+00 : bf16
    %0 = vector.broadcast %cst : bf16 to vector<4x1x128xbf16>
    %c0 = arith.constant 0 : index
    %c0_0 = arith.constant 0 : index
    %c0_1 = arith.constant 0 : index
    %1 = vector.load %arg7[%c0, %c0_0, %c0_1] : memref<4x18x128xbf16, #tpu.memory_space<vmem>>, vector<4x1x128xbf16>
    tpu.vector_store %arg7[%c0, %c0_0, %c0_1], %0 {strides = array<i32>} : memref<4x18x128xbf16, #tpu.memory_space<vmem>>, vector<4x1x128xbf16>,
    %c0_2 = arith.constant 0 : index
    %c17 = arith.constant 17 : index
    %c0_3 = arith.constant 0 : index
    %2 = vector.load %arg7[%c0_2, %c17, %c0_3] : memref<4x18x128xbf16, #tpu.memory_space<vmem>>, vector<4x1x128xbf16>
    tpu.vector_store %arg7[%c0_2, %c17, %c0_3], %0 {strides = array<i32>} : memref<4x18x128xbf16, #tpu.memory_space<vmem>>, vector<4x1x128xbf16>,
    %c0_4 = arith.constant 0 : index
    %c0_5 = arith.constant 0 : index
    %c0_6 = arith.constant 0 : index
    %3 = vector.load %arg1[%c0_4, %c0_5, %c0_6] : memref<4x16x128xf32, #tpu.memory_space<vmem>>, vector<4x16x128xf32>
    %4 = arith.truncf %3 : vector<4x16x128xf32> to vector<4x16x128xbf16>
    %c0_7 = arith.constant 0 : index
    %c1 = arith.constant 1 : index
    %c0_8 = arith.constant 0 : index
    %5 = vector.load %arg7[%c0_7, %c1, %c0_8] : memref<4x18x128xbf16, #tpu.memory_space<vmem>>, vector<4x16x128xbf16>
    tpu.vector_store %arg7[%c0_7, %c1, %c0_8], %4 {strides = array<i32>} : memref<4x18x128xbf16, #tpu.memory_space<vmem>>, vector<4x16x128xbf16>,
    %c0_9 = arith.constant 0 : index
    %c0_10 = arith.constant 0 : index
    %c0_11 = arith.constant 0 : index
    %6 = vector.load %arg7[%c0_9, %c0_10, %c0_11] : memref<4x18x128xbf16, #tpu.memory_space<vmem>>, vector<4x16x128xbf16>
    %7 = vector.shape_cast %6 : vector<4x16x128xbf16> to vector<64x128xbf16>
    %c0_12 = arith.constant 0 : index
    %c0_13 = arith.constant 0 : index
    %8 = vector.load %arg2[%c0_12, %c0_13] : memref<384x128xbf16, #tpu.memory_space<vmem>>, vector<128x128xbf16>
    %cst_14 = arith.constant dense<0.000000e+00> : vector<64x128xf32>
    %9 = tpu.matmul %7, %8, %cst_14 {dimension_numbers = #tpu.dot_dimension_numbers<[1], [0], [0], [1], [0, 0, 1, 1], [], []>} : vector<64x128xbf16>, vector<128x128xbf16>, vector<64x128xf32> -> vector<64x128xf32>
    %c0_15 = arith.constant 0 : index
    %c1_16 = arith.constant 1 : index
    %c0_17 = arith.constant 0 : index
    %10 = vector.load %arg7[%c0_15, %c1_16, %c0_17] : memref<4x18x128xbf16, #tpu.memory_space<vmem>>, vector<4x16x128xbf16>
    %11 = vector.shape_cast %10 : vector<4x16x128xbf16> to vector<64x128xbf16>
    %c128 = arith.constant 128 : index
    %c0_18 = arith.constant 0 : index
    %12 = vector.load %arg2[%c128, %c0_18] : memref<384x128xbf16, #tpu.memory_space<vmem>>, vector<128x128xbf16>
    %cst_19 = arith.constant dense<0.000000e+00> : vector<64x128xf32>
    %13 = tpu.matmul %11, %12, %cst_19 {dimension_numbers = #tpu.dot_dimension_numbers<[1], [0], [0], [1], [0, 0, 1, 1], [], []>} : vector<64x128xbf16>, vector<128x128xbf16>, vector<64x128xf32> -> vector<64x128xf32>
    %14 = arith.addf %9, %13 : vector<64x128xf32>
    %c0_20 = arith.constant 0 : index
    %c2 = arith.constant 2 : index
    %c0_21 = arith.constant 0 : index
    %15 = vector.load %arg7[%c0_20, %c2, %c0_21] : memref<4x18x128xbf16, #tpu.memory_space<vmem>>, vector<4x16x128xbf16>
    %16 = vector.shape_cast %15 : vector<4x16x128xbf16> to vector<64x128xbf16>
    %c256 = arith.constant 256 : index
    %c0_22 = arith.constant 0 : index
    %17 = vector.load %arg2[%c256, %c0_22] : memref<384x128xbf16, #tpu.memory_space<vmem>>, vector<128x128xbf16>
    %cst_23 = arith.constant dense<0.000000e+00> : vector<64x128xf32>
    %18 = tpu.matmul %16, %17, %cst_23 {dimension_numbers = #tpu.dot_dimension_numbers<[1], [0], [0], [1], [0, 0, 1, 1], [], []>} : vector<64x128xbf16>, vector<128x128xbf16>, vector<64x128xf32> -> vector<64x128xf32>
    %19 = arith.addf %14, %18 : vector<64x128xf32>
    %c0_24 = arith.constant 0 : index
    %c0_25 = arith.constant 0 : index
    %20 = vector.load %arg3[%c0_24, %c0_25] : memref<1x128xf32, #tpu.memory_space<vmem>>, vector<1x128xf32>
    %21 = vector.broadcast %20 : vector<1x128xf32> to vector<64x128xf32>
    %22 = arith.addf %19, %21 : vector<64x128xf32>
    %cst_26 = arith.constant 0.000000e+00 : f32
    %23 = vector.broadcast %cst_26 : f32 to vector<64x128xf32>
    %24 = arith.maximumf %22, %23 : vector<64x128xf32>
    %25 = arith.truncf %24 : vector<64x128xf32> to vector<64x128xbf16>
    %26 = vector.shape_cast %25 : vector<64x128xbf16> to vector<4x16x128xbf16>
    %c0_27 = arith.constant 0 : index
    %c1_28 = arith.constant 1 : index
    %c0_29 = arith.constant 0 : index
    %27 = vector.load %arg7[%c0_27, %c1_28, %c0_29] : memref<4x18x128xbf16, #tpu.memory_space<vmem>>, vector<4x16x128xbf16>
    tpu.vector_store %arg7[%c0_27, %c1_28, %c0_29], %26 {strides = array<i32>} : memref<4x18x128xbf16, #tpu.memory_space<vmem>>, vector<4x16x128xbf16>,
    %c0_30 = arith.constant 0 : index
    %c0_31 = arith.constant 0 : index
    %c0_32 = arith.constant 0 : index
    %28 = vector.load %arg7[%c0_30, %c0_31, %c0_32] : memref<4x18x128xbf16, #tpu.memory_space<vmem>>, vector<4x16x128xbf16>
    %29 = vector.shape_cast %28 : vector<4x16x128xbf16> to vector<64x128xbf16>
    %c0_33 = arith.constant 0 : index
    %c0_34 = arith.constant 0 : index
    %30 = vector.load %arg4[%c0_33, %c0_34] : memref<384x128xbf16, #tpu.memory_space<vmem>>, vector<128x128xbf16>
    %cst_35 = arith.constant dense<0.000000e+00> : vector<64x128xf32>
    %31 = tpu.matmul %29, %30, %cst_35 {dimension_numbers = #tpu.dot_dimension_numbers<[1], [0], [0], [1], [0, 0, 1, 1], [], []>} : vector<64x128xbf16>, vector<128x128xbf16>, vector<64x128xf32> -> vector<64x128xf32>
    %c0_36 = arith.constant 0 : index
    %c1_37 = arith.constant 1 : index
    %c0_38 = arith.constant 0 : index
    %32 = vector.load %arg7[%c0_36, %c1_37, %c0_38] : memref<4x18x128xbf16, #tpu.memory_space<vmem>>, vector<4x16x128xbf16>
    %33 = vector.shape_cast %32 : vector<4x16x128xbf16> to vector<64x128xbf16>
    %c128_39 = arith.constant 128 : index
    %c0_40 = arith.constant 0 : index
    %34 = vector.load %arg4[%c128_39, %c0_40] : memref<384x128xbf16, #tpu.memory_space<vmem>>, vector<128x128xbf16>
    %cst_41 = arith.constant dense<0.000000e+00> : vector<64x128xf32>
    %35 = tpu.matmul %33, %34, %cst_41 {dimension_numbers = #tpu.dot_dimension_numbers<[1], [0], [0], [1], [0, 0, 1, 1], [], []>} : vector<64x128xbf16>, vector<128x128xbf16>, vector<64x128xf32> -> vector<64x128xf32>
    %36 = arith.addf %31, %35 : vector<64x128xf32>
    %c0_42 = arith.constant 0 : index
    %c2_43 = arith.constant 2 : index
    %c0_44 = arith.constant 0 : index
    %37 = vector.load %arg7[%c0_42, %c2_43, %c0_44] : memref<4x18x128xbf16, #tpu.memory_space<vmem>>, vector<4x16x128xbf16>
    %38 = vector.shape_cast %37 : vector<4x16x128xbf16> to vector<64x128xbf16>
    %c256_45 = arith.constant 256 : index
    %c0_46 = arith.constant 0 : index
    %39 = vector.load %arg4[%c256_45, %c0_46] : memref<384x128xbf16, #tpu.memory_space<vmem>>, vector<128x128xbf16>
    %cst_47 = arith.constant dense<0.000000e+00> : vector<64x128xf32>
    %40 = tpu.matmul %38, %39, %cst_47 {dimension_numbers = #tpu.dot_dimension_numbers<[1], [0], [0], [1], [0, 0, 1, 1], [], []>} : vector<64x128xbf16>, vector<128x128xbf16>, vector<64x128xf32> -> vector<64x128xf32>
    %41 = arith.addf %36, %40 : vector<64x128xf32>
    %c0_48 = arith.constant 0 : index
    %c0_49 = arith.constant 0 : index
    %42 = vector.load %arg5[%c0_48, %c0_49] : memref<1x128xf32, #tpu.memory_space<vmem>>, vector<1x128xf32>
    %43 = vector.broadcast %42 : vector<1x128xf32> to vector<64x128xf32>
    %44 = arith.addf %41, %43 : vector<64x128xf32>
    %cst_50 = arith.constant 0.000000e+00 : f32
    %45 = vector.broadcast %cst_50 : f32 to vector<64x128xf32>
    %46 = arith.maximumf %44, %45 : vector<64x128xf32>
    %c0_51 = arith.constant 0 : index
    %c0_52 = arith.constant 0 : index
    %c0_53 = arith.constant 0 : index
    %47 = vector.load %arg1[%c0_51, %c0_52, %c0_53] : memref<4x16x128xf32, #tpu.memory_space<vmem>>, vector<4x16x128xf32>
    %48 = vector.shape_cast %46 : vector<64x128xf32> to vector<4x16x128xf32>
    %49 = arith.addf %47, %48 : vector<4x16x128xf32>
    %c0_54 = arith.constant 0 : index
    %c0_55 = arith.constant 0 : index
    %c0_56 = arith.constant 0 : index
    %50 = vector.load %arg6[%c0_54, %c0_55, %c0_56] : memref<4x16x128xf32, #tpu.memory_space<vmem>>, vector<4x16x128xf32>
    tpu.vector_store %arg6[%c0_54, %c0_55, %c0_56], %49 {strides = array<i32>} : memref<4x16x128xf32, #tpu.memory_space<vmem>>, vector<4x16x128xf32>,
    return
  }
  func.func @transform_0(%arg0: i32) -> (i32, i32, i32) {
    %c0_i32 = arith.constant 0 : i32
    %c0_i32_0 = arith.constant 0 : i32
    %c0_i32_1 = arith.constant 0 : i32
    return %arg0, %c0_i32, %c0_i32_0 : i32, i32, i32
  }
  func.func @transform_1(%arg0: i32) -> (i32, i32) {
    %c0_i32 = arith.constant 0 : i32
    %c0_i32_0 = arith.constant 0 : i32
    %c0_i32_1 = arith.constant 0 : i32
    return %c0_i32, %c0_i32_0 : i32, i32
  }
  func.func @transform_2(%arg0: i32) -> (i32, i32) {
    %c0_i32 = arith.constant 0 : i32
    %c0_i32_0 = arith.constant 0 : i32
    %c0_i32_1 = arith.constant 0 : i32
    return %c0_i32, %c0_i32_0 : i32, i32
  }
  func.func @transform_3(%arg0: i32) -> (i32, i32) {
    %c0_i32 = arith.constant 0 : i32
    %c0_i32_0 = arith.constant 0 : i32
    %c0_i32_1 = arith.constant 0 : i32
    return %c0_i32, %c0_i32_0 : i32, i32
  }
  func.func @transform_4(%arg0: i32) -> (i32, i32) {
    %c0_i32 = arith.constant 0 : i32
    %c0_i32_0 = arith.constant 0 : i32
    %c0_i32_1 = arith.constant 0 : i32
    return %c0_i32, %c0_i32_0 : i32, i32
  }
  func.func @transform_5(%arg0: i32) -> (i32, i32, i32) {
    %c0_i32 = arith.constant 0 : i32
    %c0_i32_0 = arith.constant 0 : i32
    %c0_i32_1 = arith.constant 0 : i32
    return %arg0, %c0_i32, %c0_i32_0 : i32, i32, i32
  }
}

</mosaic_0001>

<bundles_post_ra>
// kernel: basic_block_nhwc.1
= control target key start
LH: loop header
LB: loop body
LE: loop exit
PB: predicated region body
PF: predicated region fallthrough
CT: control target
= control target key end

     0   :  { %s2349_s18 = smov 0   ;;  %s2865_s0 = inlined_call_operand.vmem [shape: f32[8,16,128], index: 0, kind: input, shape index: {}]   ;;  %s2866_s1 = inlined_call_operand.vmem [shape: bf16[384,128], index: 1, kind: input, shape index: {}]   ;;  %s2867_s2 = inlined_call_operand.vmem [shape: f32[1,128], index: 2, kind: input, shape index: {}]   ;;  %s2868_s3 = inlined_call_operand.vmem [shape: bf16[384,128], index: 3, kind: input, shape index: {}]   ;;  %s2869_s4 = inlined_call_operand.vmem [shape: f32[1,128], index: 4, kind: input, shape index: {}]   ;;  %s2870_s5 = inlined_call_operand.vmem [shape: f32[8,16,128], index: 5, kind: output, shape index: {}]  }
   0x1 LB: > { %s1870_s19 = sadd.s32 4294967295, %s2317_s18   ;;  %p1874_p0 = scmp.ge.s32.totalorder %s2317_s18, 1  ;;  %s2317_s18 = sphi %s2349_s18, %s15_s18  }
   0x2   : > { %p189_p1 = scmp.lt.s32.totalorder %s2317_s18, 3 }
   0x4   : > { %p190_p2 = pnand %p1874_p0, %p189_p1 }
   0x5   : > { %v2255_v0 = vld [vmem:[%s2866_s1 + $0x40] sm:$0xff] (!%p190_p2)   ;;  %s1875_s22 = sshll.u32 (!%p190_p2), %s1870_s19, 2  ;;  %v2256_v1 = vld [vmem:[%s2866_s1 + $0x48] sm:$0xff] (!%p190_p2)   ;;  %v2257_v2 = vld [vmem:[%s2866_s1 + $0x50] sm:$0xff] (!%p190_p2)   ;;  %vm234_vm0 = vcmask (!%p190_p2), 1040384   ;;  %vm377_vm5 = vcmask (!%p190_p2), 1043456  }
   0x6   : > { %193 = sbr.rel (%p190_p2) target bundleno = 660 (0x294), region = 40  ;;  %p220_p3 = scmp.lt.s32.totalorder (!%p190_p2), %s1875_s22, 7  ;;  %2071 = vmatprep.subr.bf16.mxu0 (!%p190_p2), %v2255_v0  ;;  %v2258_v3 = vld [vmem:[%s2866_s1 + $0x58] sm:$0xff] (!%p190_p2)   ;;  %vm235_vm1 = vsmask.f32 (!%p190_p2), 256  ;;  %v2259_v8 = vld [vmem:[%s2866_s1 + $0x60] sm:$0xff] (!%p190_p2)  }
   0x7   : > { %2072 = vmatpush3.bf16.msra.mxu0 (!%p190_p2), %v2255_v0  ;;  %v237_v4 = vld [vmem:[#allocation2] sm:$0x1] (!%p190_p2)  ;;  %vm249_vm2 = vsmask.f32 (!%p190_p2), 7938  ;;  %vm2380_vm3 = vmand (!%p190_p2), %vm234_vm0, %vm235_vm1  ;;  %v251_v6 = vld [vmem:[#allocation2 + $0x8] sm:$0x1] (!%p190_p2) }
   0x8   : > { %2073 = vmatprep.subr.bf16.mxu0 (!%p190_p2), %v2256_v1  ;;  %v238_v9 = vsel (!%p190_p2), %vm2380_vm3, 0, %v237_v4  ;;  %vm2391_vm4 = vmand (!%p190_p2), %vm234_vm0, %vm249_vm2  ;;  %vm295_vm6 = vsmask.f32 (!%p190_p2), 4368  ;;  %v240_v17 = vld [vmem:[#allocation2 + $0xc] sm:$0x1] (!%p190_p2)  ;;  %v2261_v40 = vld [vmem:[%s2866_s1 + $0x70] sm:$0xff] (!%p190_p2)  }
   0x9   : > { %239 = vst [vmem:[#allocation2] sm:$0x1] (!%p190_p2), %v238_v9  ;;  %v252_v13 = vsel (!%p190_p2), %vm2391_vm4, 0, %v251_v6  ;;  %v241_v20 = vsel (!%p190_p2), %vm2380_vm3, 0, %v240_v17  ;;  %v254_v21 = vld [vmem:[#allocation2 + $0x14] sm:$0x1] (!%p190_p2)  ;;  %vm2406_vm7 = vmor (!%p190_p2), %vm235_vm1, %vm295_vm6 }
   0xa   : > { %253 = vst [vmem:[#allocation2 + $0x8] sm:$0x1] (!%p190_p2), %v252_v13  ;;  %242 = vst [vmem:[#allocation2 + $0xc] sm:$0x1] (!%p190_p2), %v241_v20  ;;  %v255_v24 = vsel (!%p190_p2), %vm2391_vm4, 0, %v254_v21  ;;  %v2260_v30 = vld [vmem:[%s2866_s1 + $0x68] sm:$0xff] (!%p190_p2)  }
   0xb   : > { %2074 = vmatpush3.bf16.msra.mxu0 (!%p190_p2), %v2256_v1  ;;  %256 = vst [vmem:[#allocation2 + $0x14] sm:$0x1] (!%p190_p2), %v255_v24  ;;  %vm2415_vm8 = vmand (!%p190_p2), %vm377_vm5, %vm249_vm2  ;;  %v2262_v57 = vld [vmem:[%s2866_s1 + $0x78] sm:$0xff] (!%p190_p2)   ;;  %vm435_vm9 = vsmask.f32 (!%p190_p2), 3328  ;;  %vm828_vm12 = vcmask (!%p190_p2), 1042432  }
   0xc   : > { %2075 = vmatprep.subr.bf16.mxu0 (!%p190_p2), %v2257_v2  ;;  %v243_v60 = vld [vmem:[#allocation2 + $0x18] sm:$0x1] (!%p190_p2)  ;;  %v257_v61 = vld [vmem:[#allocation2 + $0x20] sm:$0x1] (!%p190_p2)  ;;  %vm436_vm10 = vsmask.f32 (!%p190_p2), 7440 }
   0xd   : > { %s2884_s22 = smov (!%p220_p3, %s1875_s22), 7  ;;  %v244_v0 = vsel %vm2380_vm3, 0, %v243_v60  ;;  %v258_v1 = vsel %vm2391_vm4, 0, %v257_v61  ;;  %v246_v4 = vld [vmem:[#allocation2 + $0x24] sm:$0x1]  ;;  %vm2483_vm11 = vmor %vm435_vm9, %vm436_vm10  ;;  %vm829_vm13 = vcmask 1046532  }
   0xe   : > { %s1981_s27 = sshll.u32 %s2884_s22, 4  ;;  %245 = vst [vmem:[#allocation2 + $0x18] sm:$0x1] %v244_v0  ;;  %259 = vst [vmem:[#allocation2 + $0x20] sm:$0x1] %v258_v1 }
   0xf   : > { %s2374_s30 = scalar_lea.vmem %s2865_s0, %s1981_s27  ;;  %2076 = vmatpush3.bf16.msra.mxu0 %v2257_v2  ;;  %v260_v9 = vld [vmem:[#allocation2 + $0x2c] sm:$0x1]  ;;  %vm2573_vm14 = vmor %vm828_vm12, %vm829_vm13  ;;  %s2846_s19 = scalar_lea.vmem %s2870_s5, %s1981_s27 }
  0x10   : > { %v263_v7 = vld [vmem:[%s2374_s30] sm:$0xff]  ;;  %v264_v11 = vld [vmem:[%s2374_s30 + $0x8] sm:$0xff]  ;;  %2077 = vmatprep.subr.bf16.mxu0 %v2258_v3  ;;  %v265_v22 = vld [vmem:[%s2374_s30 + $0x10] sm:$0xff] }
  0x11   : > { %v1983_v12 = vpack.c.bf16 %v263_v7, %v263_v7  ;;  %v1984_v14 = vpack.c.bf16 %v264_v11, %v264_v11  ;;  %v266_v25 = vld [vmem:[%s2374_s30 + $0x18] sm:$0xff]  ;;  %v1985_v26 = vpack.c.bf16 %v265_v22, %v265_v22  ;;  %v379_v41 = vld [vmem:[#allocation2] sm:$0xf]  ;;  %v383_v45 = vld [vmem:[#allocation2 + $0x8] sm:$0x1] }
  0x12   : > { %v1986_v29 = vpack.c.bf16 %v266_v25, %v266_v25  ;;  %v267_v47 = vld [vmem:[%s2374_s30 + $0x20] sm:$0xff]  ;;  %v268_v51 = vld [vmem:[%s2374_s30 + $0x28] sm:$0xff]  ;;  %v390_v59 = vld [vmem:[#allocation2 + $0x14] sm:$0x1] }
  0x13   : > { %v298_v15 = vshrl.u32 %v1983_v12, 16  ;;  %v301_v16 = vshll.u32 %v1983_v12, 16  ;;  %v306_v18 = vshrl.u32 %v1984_v14, 16  ;;  %v309_v19 = vshll.u32 %v1984_v14, 16  ;;  %2078 = vmatpush3.bf16.msra.mxu0 %v2258_v3  ;;  %v386_v55 = vld [vmem:[#allocation2 + $0xc] sm:$0xf] }
  0x14   : > { %2079 = vmatprep.subr.bf16.mxu0 %v2259_v8  ;;  %v315_v34 = vshrl.u32 %v1985_v26, 16  ;;  %v318_v35 = vshll.u32 %v1985_v26, 16  ;;  %v323_v38 = vshrl.u32 %v1986_v29, 16  ;;  %v326_v39 = vshll.u32 %v1986_v29, 16  ;;  %v2452_v11 = vld [vmem:[%s2866_s1] sm:$0xff]   ;;  %v270_v10 = vld [vmem:[%s2374_s30 + $0x38] sm:$0xff] }
  0x15   : > { %v300_v23 = vrot.slane %v298_v15, 7  ;;  %v308_v28 = vrot.slane %v306_v18, 7  ;;  %v2430_v52 = vpack.c.bf16 %v267_v47, %v267_v47  ;;  %v1988_v56 = vpack.c.bf16 %v268_v51, %v268_v51  ;;  %v269_v15 = vld [vmem:[%s2374_s30 + $0x30] sm:$0xff] }
  0x16   : > { %v317_v42 = vrot.slane %v315_v34, 7  ;;  %v325_v46 = vrot.slane %v323_v38, 7  ;;  %v261_v14 = vsel %vm2391_vm4, 0, %v260_v9  ;;  %v1989_v26 = vpack.c.bf16 %v269_v15, %v269_v15 }
  0x17   : > { %v303_v31 = vor.u32 %v301_v16, %v300_v23  ;;  %v304_v32 = vrot.slane %v300_v23, 4  ;;  %v311_v36 = vor.u32 %v309_v19, %v308_v28  ;;  %v313_v37 = vrot.slane %v308_v28, 4  ;;  %2080 = vmatpush3.bf16.msra.mxu0 %v2259_v8  ;;  %262 = vst [vmem:[#allocation2 + $0x2c] sm:$0x1] %v261_v14  ;;  %v2264_v14 = vld [vmem:[%s2866_s1 + $0x8] sm:$0xff]  }
  0x18   : > { %2081 = vmatprep.subr.bf16.mxu0 %v2260_v30  ;;  %v320_v49 = vor.u32 %v318_v35, %v317_v42  ;;  %v321_v50 = vrot.slane %v317_v42, 4  ;;  %v328_v53 = vor.u32 %v326_v39, %v325_v46  ;;  %v330_v54 = vrot.slane %v325_v46, 4 }
  0x19   : > { %v312_v43 = vsel %vm2406_vm7, %v304_v32, %v311_v36  ;;  %v380_v44 = vsel %vm2415_vm8, %v303_v31, %v379_v41  ;;  %v384_v48 = vsel %vm2380_vm3, %v313_v37, %v383_v45  ;;  %v332_v2 = vshrl.u32 %v2430_v52, 16 }
  0x1a   : > { %381 = vst [vmem:[#allocation2] sm:$0xf] %v380_v44  ;;  %382 = vst [vmem:[#allocation2 + $0x4] sm:$0xf] %v312_v43  ;;  %v387_v58 = vsel %vm2415_vm8, %v320_v49, %v386_v55  ;;  %v329_v62 = vsel %vm2406_vm7, %v321_v50, %v328_v53  ;;  %v391_v63 = vsel %vm2380_vm3, %v330_v54, %v390_v59  ;;  %v340_v3 = vshrl.u32 %v1988_v56, 16 }
  0x1b   : > { %385 = vst [vmem:[#allocation2 + $0x8] sm:$0x1] %v384_v48  ;;  %2082 = vmatpush3.bf16.msra.mxu0 %v2260_v30  ;;  %388 = vst [vmem:[#allocation2 + $0xc] sm:$0xf] %v387_v58  ;;  %v335_v6 = vshll.u32 %v2430_v52, 16  ;;  %v343_v7 = vshll.u32 %v1988_v56, 16  ;;  %v1990_v49 = vpack.c.bf16 %v270_v10, %v270_v10 }
  0x1c   : > { %2083 = vmatprep.subr.bf16.mxu0 %v2261_v40  ;;  %389 = vst [vmem:[#allocation2 + $0x10] sm:$0xf] %v329_v62  ;;  %392 = vst [vmem:[#allocation2 + $0x14] sm:$0x1] %v391_v63  ;;  %v247_v8 = vsel %vm2380_vm3, 0, %v246_v4  ;;  %v334_v12 = vrot.slane %v332_v2, 7 }
  0x1d   : > { %v342_v13 = vrot.slane %v340_v3, 7  ;;  %248 = vst [vmem:[#allocation2 + $0x24] sm:$0x1] %v247_v8  ;;  %v393_v44 = vld [vmem:[#allocation2 + $0x18] sm:$0xf]  ;;  %v349_v62 = vshrl.u32 %v1989_v26, 16 }
  0x1e   : > { %v338_v24 = vrot.slane %v334_v12, 4  ;;  %v337_v38 = vor.u32 %v335_v6, %v334_v12  ;;  %v397_v54 = vld [vmem:[#allocation2 + $0x20] sm:$0x1]  ;;  %v352_v2 = vshll.u32 %v1989_v26, 16  ;;  %v360_v12 = vshll.u32 %v1990_v49, 16 }
  0x1f   : > { %2084 = vmatpush3.bf16.msra.mxu0 %v2261_v40  ;;  %v345_v25 = vor.u32 %v343_v7, %v342_v13  ;;  %v351_v6 = vrot.slane %v349_v62, 7  ;;  %v357_v7 = vshrl.u32 %v1990_v49, 16  ;;  %v2266_v49 = vld [vmem:[%s2866_s1 + $0x18] sm:$0xff]  }
  0x20   : > { %2085 = vmatprep.subr.bf16.mxu0 %v2262_v57  ;;  %v394_v58 = vsel %vm2415_vm8, %v337_v38, %v393_v44 }
  0x21   : > { %v2457_v16 = vld [vmem:[#allocation2] sm:$0xf]  ;;  %v2459_v17 = vld [vmem:[#allocation2 + $0x4] sm:$0xf]  ;;  %v346_v39 = vsel %vm2406_vm7, %v338_v24, %v345_v25  ;;  %395 = vst [vmem:[#allocation2 + $0x18] sm:$0xf] %v394_v58 }
  0x22   : > { %v2461_v18 = vld [vmem:[#allocation2 + $0x8] sm:$0x1]  ;;  %v439_v19 = vshrl.u32 %v2457_v16, 16  ;;  %v442_v20 = vshll.u32 %v2457_v16, 16  ;;  %v448_v21 = vshll.u32 %v2459_v17, 16  ;;  %v452_v22 = vshrl.u32 %v2459_v17, 16 }
  0x23   : > { %v458_v23 = vshll.u32 %v2461_v18, 16  ;;  %v2469_v32 = vld [vmem:[#allocation2 + $0xc] sm:$0xf]  ;;  %2086 = vmatpush3.bf16.msra.mxu0 %v2262_v57  ;;  %v2471_v35 = vld [vmem:[#allocation2 + $0x10] sm:$0xf]  ;;  %v347_v57 = vrot.slane %v342_v13, 4 }
  0x24   : > { %v441_v28 = vrot.slane %v439_v19, 4  ;;  %v444_v29 = vrot.slane %v442_v20, 5  ;;  %v450_v30 = vrot.slane %v448_v21, 5  ;;  %v454_v31 = vrot.slane %v452_v22, 4  ;;  %v2473_v36 = vld [vmem:[#allocation2 + $0x14] sm:$0x1]  ;;  %2095 = vmatprep.subr.bf16.mxu0 %v2452_v11 }
  0x25   : > { %v460_v34 = vrot.slane %v458_v23, 5  ;;  %v463_v37 = vshrl.u32 %v2469_v32, 16  ;;  %v466_v42 = vshll.u32 %v2469_v32, 16  ;;  %v472_v43 = vshll.u32 %v2471_v35, 16  ;;  %396 = vst [vmem:[#allocation2 + $0x1c] sm:$0xf] %v346_v39 }
  0x26   : > { %v445_v40 = vor.u32 %v444_v29, %v441_v28  ;;  %v455_v41 = vor.u32 %v454_v31, %v450_v30  ;;  %v476_v47 = vshrl.u32 %v2471_v35, 16  ;;  %v482_v48 = vshll.u32 %v2473_v36, 16  ;;  %v400_v3 = vld [vmem:[#allocation2 + $0x24] sm:$0xf]  ;;  %v404_v21 = vld [vmem:[#allocation2 + $0x2c] sm:$0x1] }
  0x27   : > { %v465_v46 = vrot.slane %v463_v37, 4  ;;  %v468_v52 = vrot.slane %v466_v42, 5  ;;  %v474_v53 = vrot.slane %v472_v43, 5  ;;  %v398_v1 = vsel %vm2380_vm3, %v347_v57, %v397_v54  ;;  %v2265_v42 = vld [vmem:[%s2866_s1 + $0x10] sm:$0xff]  }
  0x28   : > { %v446_v50 = vrot.slane %v445_v40, 4  ;;  %v456_v51 = vrot.slane %v455_v41, 4  ;;  %v478_v55 = vrot.slane %v476_v47, 4  ;;  %v484_v56 = vrot.slane %v482_v48, 5  ;;  %399 = vst [vmem:[#allocation2 + $0x20] sm:$0x1] %v398_v1 }
  0x29   : > { %v469_v61 = vor.u32 %v468_v52, %v465_v46  ;;  %v354_v20 = vor.u32 %v352_v2, %v351_v6  ;;  %v355_v10 = vrot.slane %v351_v6, 4  ;;  %v359_v23 = vrot.slane %v357_v7, 7  ;;  %v2510_v29 = vld [vmem:[#allocation2 + $0x18] sm:$0xf]  ;;  %v2268_v2 = vld [vmem:[%s2866_s1 + $0x28] sm:$0xff]  }
  0x2a   : > { %v451_v59 = vsel %vm2483_vm11, %v446_v50, %v450_v30  ;;  %v461_v60 = vsel %vm2483_vm11, %v456_v51, %v460_v34  ;;  %v479_v0 = vor.u32 %v478_v55, %v474_v53  ;;  %v487_v34 = vshrl.u32 %v2510_v29, 16 }
  0x2b   : > { %v1889_v63 = vcombine.low %v451_v59, %v461_v60  ;;  %v470_v4 = vrot.slane %v469_v61, 4  ;;  %v401_v28 = vsel %vm2415_vm8, %v354_v20, %v400_v3  ;;  %v362_v30 = vor.u32 %v360_v12, %v359_v23  ;;  %v2267_v61 = vld [vmem:[%s2866_s1 + $0x20] sm:$0xff]   ;;  %v2269_v12 = vld [vmem:[%s2866_s1 + $0x30] sm:$0xff]  }
  0x2c   : > { %v480_v8 = vrot.slane %v479_v0, 4  ;;  %v2497_v9 = vld [vmem:[#allocation2 + $0x1c] sm:$0xf]  ;;  %v364_v31 = vrot.slane %v359_v23, 4  ;;  %402 = vst [vmem:[#allocation2 + $0x24] sm:$0xf] %v401_v28  ;;  %v1901_v20 = vcombine.low %v2457_v16, %v2459_v17 }
  0x2d   : > { %2087 = vmatprep.mubr.bf16.mxu0 %v1889_v63  ;;  %v475_v13 = vsel %vm2483_vm11, %v470_v4, %v474_v53  ;;  %v496_v15 = vshll.u32 %v2497_v9, 16  ;;  %v500_v19 = vshrl.u32 %v2497_v9, 16  ;;  %v490_v37 = vshll.u32 %v2510_v29, 16  ;;  %v816_v23 = vld [vmem:[#allocation2] sm:$0xe] }
  0x2e   : > { %v485_v22 = vsel %vm2483_vm11, %v480_v8, %v484_v56  ;;  %v363_v40 = vsel %vm2406_vm7, %v355_v10, %v362_v30  ;;  %v405_v41 = vsel %vm2380_vm3, %v364_v31, %v404_v21  ;;  %v489_v43 = vrot.slane %v487_v34, 4  ;;  %v2270_v21 = vld [vmem:[%s2866_s1 + $0x38] sm:$0xff]  }
  0x2f   : > { %v1890_v24 = vcombine.low %v475_v13, %v485_v22  ;;  %v498_v25 = vrot.slane %v496_v15, 5  ;;  %v502_v26 = vrot.slane %v500_v19, 4  ;;  %v2515_v39 = vld [vmem:[#allocation2 + $0x20] sm:$0x1]  ;;  %v492_v44 = vrot.slane %v490_v37, 5 }
  0x30   : > { %v506_v47 = vshll.u32 %v2515_v39, 16  ;;  %403 = vst [vmem:[#allocation2 + $0x28] sm:$0xf] %v363_v40  ;;  %406 = vst [vmem:[#allocation2 + $0x2c] sm:$0x1] %v405_v41  ;;  %v2272_v22 = vld [vmem:[%s2866_s1 + $0x80] sm:$0xff]  }
  0x31   : > { %2088 = vmatmul.mubr.bf16.vlgmr.msra.gmra.mrb[0].mxu0 %v1890_v24  ;;  %v503_v38 = vor.u32 %v502_v26, %v498_v25  ;;  %v833_v10 = vrot.slane %v2459_v17, 5  ;;  %v1902_v24 = vcombine.low %v2469_v32, %v2471_v35  ;;  %v2274_v26 = vld [vmem:[%s2866_s1 + $0x88] sm:$0xff]   ;;  %v1913_v28 = vrot.slane %v816_v23, 9  ;;  %v2275_v32 = vld [vmem:[%s2866_s1 + $0x90] sm:$0xff]   ;;  %v2277_v40 = vld [vmem:[%s2866_s1 + $0xa0] sm:$0xff]  }
  0x32   : > { %2096 = vmatpush3.bf16.msra.mxu0 %v2452_v11  ;;  %v493_v11 = vor.u32 %v492_v44, %v489_v43  ;;  %v508_v48 = vrot.slane %v506_v47, 5  ;;  %v836_v31 = vrot.slane %v2461_v18, 5  ;;  %v2278_v41 = vld [vmem:[%s2866_s1 + $0xa8] sm:$0xff]   ;;  %v2281_v43 = vld [vmem:[%s2866_s1 + $0xb0] sm:$0xff]   ;;  %v818_v47 = vld [vmem:[#allocation2 + $0x18] sm:$0xe] }
  0x33   : > { %2097 = vmatprep.subr.bf16.mxu0 %v2264_v14  ;;  %v504_v46 = vrot.slane %v503_v38, 4  ;;  %v2530_v52 = vld [vmem:[#allocation2 + $0x24] sm:$0xf]  ;;  %v835_v30 = vrot.slane %v833_v10, 4  ;;  %v2276_v38 = vld [vmem:[%s2866_s1 + $0x98] sm:$0xff]  }
  0x34   : > { %v494_v50 = vrot.slane %v493_v11, 4  ;;  %v511_v53 = vshrl.u32 %v2530_v52, 16  ;;  %v514_v54 = vshll.u32 %v2530_v52, 16  ;;  %v817_v44 = vld [vmem:[#allocation2 + $0xc] sm:$0xe]  ;;  %v843_v11 = vrot.slane %v2473_v36, 5 }
  0x35   : > { %v509_v51 = vsel %vm2483_vm11, %v504_v46, %v508_v48  ;;  %v837_v34 = vsel %vm2573_vm14, %v835_v30, %v836_v31  ;;  %v847_v46 = vrot.slane %v2497_v9, 5  ;;  %v1914_v48 = vrot.slane %v817_v44, 9 }
  0x36   : > { %2098 = vmatpush3.bf16.msra.mxu0 %v2264_v14  ;;  %v499_v55 = vsel %vm2483_vm11, %v494_v50, %v498_v25  ;;  %v513_v59 = vrot.slane %v511_v53, 4  ;;  %v516_v60 = vrot.slane %v514_v54, 5  ;;  %v1903_v25 = vcombine.low %v2510_v29, %v2497_v9  ;;  %v2282_v50 = vld [vmem:[%s2866_s1 + $0xb8] sm:$0xff]  }
  0x37   : > { %2099 = vmatprep.subr.bf16.mxu0 %v2265_v42  ;;  %v1891_v56 = vcombine.low %v499_v55, %v509_v51  ;;  %v2536_v57 = vld [vmem:[#allocation2 + $0x28] sm:$0xf]  ;;  %v2538_v58 = vld [vmem:[#allocation2 + $0x2c] sm:$0x1]  ;;  %v834_v29 = vsel %vm2573_vm14, %v1913_v28, %v833_v10  ;;  %v849_v51 = vrot.slane %v847_v46, 4 }
  0x38   : > { %v520_v62 = vshll.u32 %v2536_v57, 16  ;;  %v524_v63 = vshrl.u32 %v2536_v57, 16  ;;  %v530_v0 = vshll.u32 %v2538_v58, 16  ;;  %v517_v1 = vor.u32 %v516_v60, %v513_v59  ;;  %v1163_v33 = vld [vmem:[#allocation2 + $0x2c] sm:$0x1] }
  0x39   : > { %2091 = vmatprep.mubr.bf16.mxu0 %v1891_v56  ;;  %v1904_v18 = vcombine.low %v2530_v52, %v2536_v57  ;;  %v1917_v37 = vcombine.low %v834_v29, %v837_v34  ;;  %v850_v52 = vrot.slane %v2515_v39, 5  ;;  %v854_v36 = vrot.slane %v2536_v57, 5  ;;  %v819_v56 = vld [vmem:[#allocation2 + $0x24] sm:$0xe] }
  0x3a   : > { %2100 = vmatpush3.bf16.msra.mxu0 %v2265_v42  ;;  %v522_v3 = vrot.slane %v520_v62, 5  ;;  %v526_v4 = vrot.slane %v524_v63, 4  ;;  %v518_v6 = vrot.slane %v517_v1, 4  ;;  %v532_v7 = vrot.slane %v530_v0, 5  ;;  %v2283_v1 = vld [vmem:[%s2868_s3 + $0x40] sm:$0xff]  }
  0x3b   : > { %2101 = vmatprep.subr.bf16.mxu0 %v2266_v49  ;;  %v840_v42 = vrot.slane %v2471_v35, 5  ;;  %v1915_v35 = vrot.slane %v818_v47, 9  ;;  %v851_v55 = vsel %vm2573_vm14, %v849_v51, %v850_v52  ;;  %v1916_v60 = vrot.slane %v819_v56, 9  ;;  %2143 = vmatprep.subr.bf16.mxu1 %v2283_v1  ;;  %v1145_v47 = vld [vmem:[#allocation2 + $0xc] sm:$0xf] }
  0x3c   : > { %v527_v8 = vor.u32 %v526_v4, %v522_v3  ;;  %v523_v13 = vsel %vm2483_vm11, %v518_v6, %v522_v3  ;;  %v857_v62 = vrot.slane %v2538_v58, 5  ;;  %2144 = vmatpush3.bf16.msra.mxu1 %v2283_v1  ;;  %v2284_v58 = vld [vmem:[%s2868_s3 + $0x48] sm:$0xff]   ;;  %v2286_v3 = vld [vmem:[%s2868_s3 + $0x58] sm:$0xff]   ;;  %v2287_v4 = vld [vmem:[%s2868_s3 + $0x60] sm:$0xff]  }
  0x3d   : > { %v841_v53 = vsel %vm2573_vm14, %v1914_v48, %v840_v42  ;;  %v848_v54 = vsel %vm2573_vm14, %v1915_v35, %v847_v46  ;;  %v855_v57 = vsel %vm2573_vm14, %v1916_v60, %v854_v36  ;;  %2145 = vmatprep.subr.bf16.mxu1 %v2284_v58  ;;  %v2288_v6 = vld [vmem:[%s2868_s3 + $0x68] sm:$0xff]   ;;  %v1149_v56 = vld [vmem:[#allocation2 + $0x14] sm:$0x1] }
  0x3e   : > { %2102 = vmatpush3.bf16.msra.mxu0 %v2266_v49  ;;  %v528_v14 = vrot.slane %v527_v8, 4  ;;  %v842_v49 = vrot.slane %v840_v42, 4  ;;  %v1919_v39 = vcombine.low %v848_v54, %v851_v55  ;;  %v2290_v8 = vld [vmem:[%s2868_s3 + $0x78] sm:$0xff]  }
  0x3f   : > { %2103 = vmatprep.subr.bf16.mxu0 %v2267_v61 }
  0x40   : > { %v533_v15 = vsel %vm2483_vm11, %v528_v14, %v532_v7  ;;  %v844_v9 = vsel %vm2573_vm14, %v842_v49, %v843_v11  ;;  %2146 = vmatpush3.bf16.msra.mxu1 %v2284_v58  ;;  %v2289_v7 = vld [vmem:[%s2868_s3 + $0x70] sm:$0xff]  }
  0x41   : > { %v1892_v19 = vcombine.low %v523_v13, %v533_v15  ;;  %v1918_v59 = vcombine.low %v841_v53, %v844_v9  ;;  %v2652_v13 = vld [vmem:[%s2867_s2] ss:$0 sm:$0xff] }
  0x42   : > { %2104 = vmatpush3.bf16.msra.mxu0 %v2267_v61  ;;  %v856_v61 = vrot.slane %v854_v36, 4 }
  0x43   : > { %2105 = vmatprep.subr.bf16.mxu0 %v2268_v2  ;;  %2092 = vmatmul.mubr.bf16.gmra.mrb[4].mxu0 %v1892_v19 }
  0x44   : > { %2111 = vmatprep.mubr.bf16.mxu0 %v1901_v20  ;;  %v858_v63 = vsel %vm2573_vm14, %v856_v61, %v857_v62 }
  0x45   : > { %v1920_v0 = vcombine.low %v855_v57, %v858_v63  ;;  %v1142_v57 = vld [vmem:[#allocation2 + $0x8] sm:$0x1] }
  0x46   : > { %2106 = vmatpush3.bf16.msra.mxu0 %v2268_v2  ;;  %v2285_v2 = vld [vmem:[%s2868_s3 + $0x50] sm:$0xff]  }
  0x47   : > { %2107 = vmatprep.subr.bf16.mxu0 %v2269_v12  ;;  %2147 = vmatprep.subr.bf16.mxu1 %v2285_v2 }
  0x48   : > { %2148 = vmatpush3.bf16.msra.mxu1 %v2285_v2 }
  0x49   : > { %2149 = vmatprep.subr.bf16.mxu1 %v2286_v3 }
  0x4a   : > { %2108 = vmatpush3.bf16.msra.mxu0 %v2269_v12  ;;  %v2646_v12 = vld [vmem:[%s2868_s3] sm:$0xff]  }
  0x4b   : > { %2109 = vmatprep.subr.bf16.mxu0 %v2270_v21 }
  0x4c   : > { %2150 = vmatpush3.bf16.msra.mxu1 %v2286_v3 }
  0x4d   : > { %2151 = vmatprep.subr.bf16.mxu1 %v2287_v4 }
  0x4e   : > { %2110 = vmatpush3.bf16.msra.mxu0 %v2270_v21 }
  0x4f   : > { %2119 = vmatprep.subr.bf16.mxu0 %v2272_v22 }
  0x50   : > { %2152 = vmatpush3.bf16.msra.mxu1 %v2287_v4 }
  0x51   : > { %2112 = vmatmul.mubr.bf16.vlgmr.msra.gmra.mrb[0].mxu0 %v1902_v24  ;;  %2153 = vmatprep.subr.bf16.mxu1 %v2288_v6 }
  0x52   : > { %2120 = vmatpush3.bf16.msra.mxu0 %v2272_v22  ;;  %2115 = vmatprep.mubr.bf16.mxu0 %v1903_v25 }
  0x53   : > { %2121 = vmatprep.subr.bf16.mxu0 %v2274_v26 }
  0x54   : > { %2154 = vmatpush3.bf16.msra.mxu1 %v2288_v6 }
  0x55   : > { %2155 = vmatprep.subr.bf16.mxu1 %v2289_v7 }
  0x56   : > { %2122 = vmatpush3.bf16.msra.mxu0 %v2274_v26 }
  0x57   : > { %2123 = vmatprep.subr.bf16.mxu0 %v2275_v32 }
  0x58   : > { %2156 = vmatpush3.bf16.msra.mxu1 %v2289_v7 }
  0x59   : > { %2116 = vmatmul.mubr.bf16.gmra.mrb[4].mxu0 %v1904_v18  ;;  %2157 = vmatprep.subr.bf16.mxu1 %v2290_v8 }
  0x5a   : > { %2124 = vmatpush3.bf16.msra.mxu0 %v2275_v32  ;;  %2135 = vmatprep.mubr.bf16.mxu0 %v1917_v37 }
  0x5b   : > { %2125 = vmatprep.subr.bf16.mxu0 %v2276_v38 }
  0x5c   : > { %2158 = vmatpush3.bf16.msra.mxu1 %v2290_v8 }
  0x5d   : > { %2167 = vmatprep.subr.bf16.mxu1 %v2646_v12 }
  0x5e   : > { %2126 = vmatpush3.bf16.msra.mxu0 %v2276_v38 }
  0x5f   : > { %2127 = vmatprep.subr.bf16.mxu0 %v2277_v40 }
  0x62   : > { %2128 = vmatpush3.bf16.msra.mxu0 %v2277_v40 }
  0x63   : > { %2129 = vmatprep.subr.bf16.mxu0 %v2278_v41 }
  0x66   : > { %2130 = vmatpush3.bf16.msra.mxu0 %v2278_v41 }
  0x67   : > { %2131 = vmatprep.subr.bf16.mxu0 %v2281_v43 }
  0x6a   : > { %2132 = vmatpush3.bf16.msra.mxu0 %v2281_v43 }
  0x6b   : > { %2133 = vmatprep.subr.bf16.mxu0 %v2282_v50 }
  0x6e   : > { %2134 = vmatpush3.bf16.msra.mxu0 %v2282_v50 }
  0x71   : > { %2136 = vmatmul.mubr.bf16.vlgmr.msra.gmra.mrb[0].mxu0 %v1918_v59 }
  0x72   : > { %2139 = vmatprep.mubr.bf16.mxu0 %v1919_v39 }
  0x79   : > { %2140 = vmatmul.mubr.bf16.gmra.mrb[4].mxu0 %v1920_v0 }
 0x144   : > { %v2137_v14 = vpop.f32.mrb[0].mxu0 }
 0x145   : > { %v1021_v15 = vadd.f32 %v2137_v14, %v2652_v13  ;;  %v973_v19 = vpop.f32.mrb[1].mxu0 }
 0x146   : > { %v1019_v20 = vadd.f32 %v2652_v13, %v973_v19  ;;  %v2138_v21 = vpop.f32.mrb[2].mxu0 }
 0x147   : > { %v1029_v22 = vmax.f32 %v1021_v15, 0.0  ;;  %v1022_v10 = vadd.f32 %v2138_v21, %v2652_v13  ;;  %v976_v23 = vpop.f32.mrb[3].mxu0  ;;  %v1159_v21 = vld [vmem:[#allocation2 + $0x24] sm:$0xf] }
 0x148   : > { %v1027_v24 = vmax.f32 %v1019_v20, 0.0  ;;  %v1020_v25 = vadd.f32 %v2652_v13, %v976_v23 }
 0x149   : > { %v1993_v26 = vpack.c.bf16 %v1029_v22, %v1029_v22  ;;  %v1030_v28 = vmax.f32 %v1022_v10, 0.0 }
 0x14a   : > { %v1991_v30 = vpack.c.bf16 %v1027_v24, %v1027_v24  ;;  %v1028_v31 = vmax.f32 %v1020_v25, 0.0  ;;  %v1152_v24 = vld [vmem:[#allocation2 + $0x18] sm:$0xf] }
 0x14b   : > { %v1077_v32 = vshrl.u32 %v1993_v26, 16  ;;  %v1994_v29 = vpack.c.bf16 %v1030_v28, %v1030_v28  ;;  %v1080_v34 = vshll.u32 %v1993_v26, 16 }
 0x14c   : > { %v1060_v18 = vshrl.u32 %v1991_v30, 16  ;;  %v1063_v37 = vshll.u32 %v1991_v30, 16  ;;  %v1992_v38 = vpack.c.bf16 %v1028_v31, %v1028_v31  ;;  %v2141_v40 = vpop.f32.mrb[4].mxu0 }
 0x14d   : > { %v1079_v41 = vrot.slane %v1077_v32, 7  ;;  %v1085_v42 = vshrl.u32 %v1994_v29, 16  ;;  %v1088_v43 = vshll.u32 %v1994_v29, 16  ;;  %v1025_v44 = vadd.f32 %v2141_v40, %v2652_v13  ;;  %v989_v46 = vpop.f32.mrb[5].mxu0 }
 0x14e   : > { %v1062_v11 = vrot.slane %v1060_v18, 7  ;;  %v1068_v48 = vshrl.u32 %v1992_v38, 16  ;;  %v1071_v49 = vshll.u32 %v1992_v38, 16  ;;  %v1023_v50 = vadd.f32 %v2652_v13, %v989_v46  ;;  %v2142_v35 = vpop.f32.mrb[6].mxu0 }
 0x14f   : > { %v1082_v51 = vor.u32 %v1080_v34, %v1079_v41  ;;  %v1083_v52 = vrot.slane %v1079_v41, 4  ;;  %v1087_v53 = vrot.slane %v1085_v42, 7  ;;  %v1033_v9 = vmax.f32 %v1025_v44, 0.0  ;;  %v992_v36 = vpop.f32.mrb[7].mxu0 }
 0x150   : > { %v1065_v54 = vor.u32 %v1063_v37, %v1062_v11  ;;  %v1066_v55 = vrot.slane %v1062_v11, 4  ;;  %v1070_v59 = vrot.slane %v1068_v48, 7  ;;  %v1031_v39 = vmax.f32 %v1023_v50, 0.0 }
 0x151   : > { %v1146_v60 = vsel %vm2415_vm8, %v1082_v51, %v1145_v47  ;;  %v1090_v61 = vor.u32 %v1088_v43, %v1087_v53  ;;  %v1092_v62 = vrot.slane %v1087_v53, 4  ;;  %v1997_v63 = vpack.c.bf16 %v1033_v9, %v1033_v9  ;;  %v1156_v51 = vld [vmem:[#allocation2 + $0x20] sm:$0x1] }
 0x152   : > { %1147 = vst [vmem:[#allocation2 + $0xc] sm:$0xf] %v1146_v60  ;;  %v1139_v0 = vsel %vm2415_vm8, %v1065_v54, %v2457_v16  ;;  %v1073_v1 = vor.u32 %v1071_v49, %v1070_v59  ;;  %v1075_v58 = vrot.slane %v1070_v59, 4  ;;  %v1995_v2 = vpack.c.bf16 %v1031_v39, %v1031_v39 }
 0x153   : > { %1140 = vst [vmem:[#allocation2] sm:$0xf] %v1139_v0  ;;  %v1091_v3 = vsel %vm2406_vm7, %v1083_v52, %v1090_v61  ;;  %v1150_v4 = vsel %vm2380_vm3, %v1092_v62, %v1149_v56  ;;  %v1111_v6 = vshrl.u32 %v1997_v63, 16  ;;  %v1114_v15 = vshll.u32 %v1997_v63, 16 }
 0x154   : > { %1148 = vst [vmem:[#allocation2 + $0x10] sm:$0xf] %v1091_v3  ;;  %1151 = vst [vmem:[#allocation2 + $0x14] sm:$0x1] %v1150_v4  ;;  %v1074_v7 = vsel %vm2406_vm7, %v1066_v55, %v1073_v1  ;;  %v1143_v8 = vsel %vm2380_vm3, %v1075_v58, %v1142_v57  ;;  %v1094_v16 = vshrl.u32 %v1995_v2, 16  ;;  %v1026_v19 = vadd.f32 %v2142_v35, %v2652_v13 }
 0x155   : > { %1141 = vst [vmem:[#allocation2 + $0x4] sm:$0xf] %v1074_v7  ;;  %1144 = vst [vmem:[#allocation2 + $0x8] sm:$0x1] %v1143_v8  ;;  %v1113_v14 = vrot.slane %v1111_v6, 7  ;;  %v1024_v20 = vadd.f32 %v2652_v13, %v992_v36  ;;  %v1097_v10 = vshll.u32 %v1995_v2, 16 }
 0x156   : > { %v1096_v22 = vrot.slane %v1094_v16, 7  ;;  %v1034_v25 = vmax.f32 %v1026_v19, 0.0 }
 0x157   : > { %v1116_v23 = vor.u32 %v1114_v15, %v1113_v14  ;;  %v1032_v26 = vmax.f32 %v1024_v20, 0.0  ;;  %v1117_v34 = vrot.slane %v1113_v14, 4 }
 0x158   : > { %v1099_v28 = vor.u32 %v1097_v10, %v1096_v22  ;;  %v1998_v31 = vpack.c.bf16 %v1034_v25, %v1034_v25  ;;  %v1100_v18 = vrot.slane %v1096_v22, 4 }
 0x159   : > { %v1160_v30 = vsel %vm2415_vm8, %v1116_v23, %v1159_v21  ;;  %v1996_v32 = vpack.c.bf16 %v1032_v26, %v1032_v26  ;;  %v2677_v29 = vld [vmem:[#allocation2 + $0xc] sm:$0xf] }
 0x15a   : > { %1161 = vst [vmem:[#allocation2 + $0x24] sm:$0xf] %v1160_v30  ;;  %v1153_v13 = vsel %vm2415_vm8, %v1099_v28, %v1152_v24  ;;  %v2681_v37 = vld [vmem:[#allocation2] sm:$0xf]  ;;  %v1219_v38 = vshrl.u32 %v2677_v29, 16  ;;  %v1119_v40 = vshrl.u32 %v1998_v31, 16 }
 0x15b   : > { %1154 = vst [vmem:[#allocation2 + $0x18] sm:$0xf] %v1153_v13  ;;  %v1122_v41 = vshll.u32 %v1998_v31, 16  ;;  %v1102_v42 = vshrl.u32 %v1996_v32, 16  ;;  %v1105_v43 = vshll.u32 %v1996_v32, 16  ;;  %v1195_v47 = vshrl.u32 %v2681_v37, 16 }
 0x15c   : > { %v2684_v44 = vld [vmem:[#allocation2 + $0x4] sm:$0xf]  ;;  %v2686_v46 = vld [vmem:[#allocation2 + $0x8] sm:$0x1]  ;;  %v1198_v11 = vshll.u32 %v2681_v37, 16  ;;  %v1121_v48 = vrot.slane %v1119_v40, 7 }
 0x15d   : > { %v1104_v49 = vrot.slane %v1102_v42, 7  ;;  %v1204_v50 = vshll.u32 %v2684_v44, 16  ;;  %v1208_v35 = vshrl.u32 %v2684_v44, 16  ;;  %v1197_v52 = vrot.slane %v1195_v47, 4  ;;  %v2694_v62 = vld [vmem:[#allocation2 + $0x10] sm:$0xf] }
 0x15e   : > { %v1200_v53 = vrot.slane %v1198_v11, 5  ;;  %v1214_v9 = vshll.u32 %v2686_v46, 16  ;;  %v1222_v36 = vshll.u32 %v2677_v29, 16  ;;  %v1124_v54 = vor.u32 %v1122_v41, %v1121_v48  ;;  %v2704_v58 = vld [vmem:[#allocation2 + $0x14] sm:$0x1] }
 0x15f   : > { %v1126_v55 = vrot.slane %v1121_v48, 4  ;;  %v1107_v56 = vor.u32 %v1105_v43, %v1104_v49  ;;  %v1109_v59 = vrot.slane %v1104_v49, 4  ;;  %v1206_v60 = vrot.slane %v1204_v50, 5 }
 0x160   : > { %v1201_v39 = vor.u32 %v1200_v53, %v1197_v52  ;;  %v1210_v61 = vrot.slane %v1208_v35, 4  ;;  %v1125_v57 = vsel %vm2406_vm7, %v1117_v34, %v1124_v54  ;;  %v1221_v4 = vrot.slane %v1219_v38, 4 }
 0x161   : > { %v1164_v63 = vsel %vm2380_vm3, %v1126_v55, %v1163_v33  ;;  %v1108_v0 = vsel %vm2406_vm7, %v1100_v18, %v1107_v56  ;;  %v1157_v1 = vsel %vm2380_vm3, %v1109_v59, %v1156_v51  ;;  %1162 = vst [vmem:[#allocation2 + $0x28] sm:$0xf] %v1125_v57  ;;  %v1224_v6 = vrot.slane %v1222_v36, 5  ;;  %v2710_v14 = vld [vmem:[#allocation2 + $0x24] sm:$0xf]  ;;  %v2292_v51 = vld [vmem:[%s2868_s3 + $0x8] sm:$0xff]  }
 0x162   : > { %1165 = vst [vmem:[#allocation2 + $0x2c] sm:$0x1] %v1164_v63  ;;  %1155 = vst [vmem:[#allocation2 + $0x1c] sm:$0xf] %v1108_v0  ;;  %v1202_v2 = vrot.slane %v1201_v39, 4  ;;  %v1211_v3 = vor.u32 %v1210_v61, %v1206_v60  ;;  %v1216_v8 = vrot.slane %v1214_v9, 5 }
 0x163   : > { %1158 = vst [vmem:[#allocation2 + $0x20] sm:$0x1] %v1157_v1  ;;  %v2706_v7 = vld [vmem:[#allocation2 + $0x18] sm:$0xf]  ;;  %v1228_v16 = vshll.u32 %v2694_v62, 16  ;;  %v1232_v27 = vshrl.u32 %v2694_v62, 16  ;;  %v1225_v15 = vor.u32 %v1224_v6, %v1221_v4 }
 0x164   : > { %v1212_v5 = vrot.slane %v1211_v3, 4  ;;  %v1238_v19 = vshll.u32 %v2704_v58, 16  ;;  %v1243_v20 = vshrl.u32 %v2706_v7, 16  ;;  %v1207_v21 = vsel %vm2483_vm11, %v1202_v2, %v1206_v60  ;;  %v1573_v57 = vld [vmem:[#allocation2 + $0xc] sm:$0xe]  ;;  %v2293_v1 = vld [vmem:[%s2868_s3 + $0x10] sm:$0xff]  }
 0x165   : > { %v1230_v22 = vrot.slane %v1228_v16, 5  ;;  %v1234_v10 = vrot.slane %v1232_v27, 4  ;;  %v1246_v23 = vshll.u32 %v2706_v7, 16  ;;  %v1226_v25 = vrot.slane %v1225_v15, 4 }
 0x166   : > { %v1217_v24 = vsel %vm2483_vm11, %v1212_v5, %v1216_v8  ;;  %v1245_v26 = vrot.slane %v1243_v20, 4  ;;  %v1267_v28 = vshrl.u32 %v2710_v14, 16  ;;  %v1270_v34 = vshll.u32 %v2710_v14, 16  ;;  %v1575_v20 = vld [vmem:[#allocation2 + $0x24] sm:$0xe] }
 0x167   : > { %v1938_v30 = vcombine.low %v1207_v21, %v1217_v24  ;;  %v1235_v31 = vor.u32 %v1234_v10, %v1230_v22  ;;  %v1248_v32 = vrot.slane %v1246_v23, 5  ;;  %v1240_v18 = vrot.slane %v1238_v19, 5 }
 0x168   : > { %v1269_v13 = vrot.slane %v1267_v28, 4  ;;  %v1272_v42 = vrot.slane %v1270_v34, 5  ;;  %v2727_v48 = vld [vmem:[#allocation2 + $0x28] sm:$0xf]  ;;  %v1231_v33 = vsel %vm2483_vm11, %v1226_v25, %v1230_v22  ;;  %v1593_v2 = vrot.slane %v2694_v62, 5  ;;  %v2296_v34 = vld [vmem:[%s2868_s3 + $0x20] sm:$0xff]  }
 0x169   : > { %2159 = vmatprep.mubr.bf16.mxu1 %v1938_v30  ;;  %v1236_v38 = vrot.slane %v1235_v31, 4  ;;  %v2721_v40 = vld [vmem:[#allocation2 + $0x1c] sm:$0xf]  ;;  %v1249_v43 = vor.u32 %v1248_v32, %v1245_v26  ;;  %v1276_v50 = vshll.u32 %v2727_v48, 16  ;;  %v1193_v36 = vld [vmem:[#allocation2 + $0x2c] sm:$0x1]  ;;  %v1950_v32 = vcombine.low %v2681_v37, %v2684_v44 }
 0x16a   : > { %v2723_v41 = vld [vmem:[#allocation2 + $0x20] sm:$0x1]  ;;  %v1252_v47 = vshll.u32 %v2721_v40, 16  ;;  %v1256_v11 = vshrl.u32 %v2721_v40, 16  ;;  %v1273_v54 = vor.u32 %v1272_v42, %v1269_v13  ;;  %v1280_v56 = vshrl.u32 %v2727_v48, 16  ;;  %v2297_v37 = vld [vmem:[%s2868_s3 + $0x28] sm:$0xff]  }
 0x16b   : > { %v1241_v49 = vsel %vm2483_vm11, %v1236_v38, %v1240_v18  ;;  %v1262_v9 = vshll.u32 %v2723_v41, 16  ;;  %v1278_v55 = vrot.slane %v1276_v50, 5  ;;  %v1250_v59 = vrot.slane %v1249_v43, 4  ;;  %v2298_v38 = vld [vmem:[%s2868_s3 + $0x30] sm:$0xff]   ;;  %v2299_v42 = vld [vmem:[%s2868_s3 + $0x38] sm:$0xff]   ;;  %v2301_v43 = vld [vmem:[%s2868_s3 + $0x80] sm:$0xff]  }
 0x16c   : > { %v1939_v35 = vcombine.low %v1231_v33, %v1241_v49  ;;  %v1254_v52 = vrot.slane %v1252_v47, 5  ;;  %v1258_v53 = vrot.slane %v1256_v11, 4  ;;  %v1282_v60 = vrot.slane %v1280_v56, 4  ;;  %v2303_v33 = vld [vmem:[%s2868_s3 + $0x88] sm:$0xff]   ;;  %v1574_v56 = vld [vmem:[#allocation2 + $0x18] sm:$0xe] }
 0x16d   : > { %v1286_v61 = vshll.u32 %v1193_v36, 16  ;;  %v1264_v0 = vrot.slane %v1262_v9, 5  ;;  %v1596_v3 = vrot.slane %v2704_v58, 5  ;;  %v1274_v4 = vrot.slane %v1273_v54, 4  ;;  %v2295_v58 = vld [vmem:[%s2868_s3 + $0x18] sm:$0xff]   ;;  %v2307_v9 = vld [vmem:[%s2868_s3 + $0xa0] sm:$0xff]  }
 0x16e   : > { %2160 = vmatmul.mubr.bf16.vlgmr.msra.gmra.mrb[0].mxu1 %v1939_v35  ;;  %v1259_v39 = vor.u32 %v1258_v53, %v1254_v52  ;;  %v1283_v6 = vor.u32 %v1282_v60, %v1278_v55  ;;  %v1255_v8 = vsel %vm2483_vm11, %v1250_v59, %v1254_v52  ;;  %v1963_v16 = vrot.slane %v1573_v57, 9  ;;  %v1572_v35 = vld [vmem:[#allocation2] sm:$0xe]  ;;  %v2310_v54 = vld [vmem:[%s2868_s3 + $0xb8] sm:$0xff]  }
 0x16f   : > { %2168 = vmatpush3.bf16.msra.mxu1 %v2646_v12  ;;  %v1595_v27 = vrot.slane %v1593_v2, 4  ;;  %v1288_v19 = vrot.slane %v1286_v61, 5  ;;  %v1607_v10 = vrot.slane %v2727_v48, 5  ;;  %v1279_v23 = vsel %vm2483_vm11, %v1274_v4, %v1278_v55 }
 0x170   : > { %2169 = vmatprep.subr.bf16.mxu1 %v2292_v51  ;;  %v1260_v63 = vrot.slane %v1259_v39, 4  ;;  %v1284_v15 = vrot.slane %v1283_v6, 4  ;;  %v2754_v21 = vsel %vm2573_vm14, %v1963_v16, %v1593_v2  ;;  %v1965_v28 = vrot.slane %v1575_v20, 9 }
 0x171   : > { %v2758_v22 = vsel %vm2573_vm14, %v1595_v27, %v1596_v3  ;;  %v1609_v30 = vrot.slane %v1607_v10, 4  ;;  %v1610_v31 = vrot.slane %v1193_v36, 5  ;;  %v1586_v47 = vrot.slane %v2684_v44, 5  ;;  %v1788_v3 = vld [vmem:[%s2374_s30] sm:$0xff] }
 0x172   : > { %v1265_v12 = vsel %vm2483_vm11, %v1260_v63, %v1264_v0  ;;  %v1289_v24 = vsel %vm2483_vm11, %v1284_v15, %v1288_v19  ;;  %v1967_v25 = vcombine.low %v2754_v21, %v2758_v22  ;;  %v2774_v45 = vsel %vm2573_vm14, %v1965_v28, %v1607_v10  ;;  %v1791_v19 = vld [vmem:[%s2374_s30 + $0x18] sm:$0xff] }
 0x173   : > { %2170 = vmatpush3.bf16.msra.mxu1 %v2292_v51  ;;  %v1940_v5 = vcombine.low %v1255_v8, %v1265_v12  ;;  %v1941_v26 = vcombine.low %v1279_v23, %v1289_v24  ;;  %v2778_v18 = vsel %vm2573_vm14, %v1609_v30, %v1610_v31  ;;  %v1951_v11 = vcombine.low %v2677_v29, %v2694_v62  ;;  %v2305_v29 = vld [vmem:[%s2868_s3 + $0x90] sm:$0xff]   ;;  %v1792_v30 = vld [vmem:[%s2374_s30 + $0x20] sm:$0xff] }
 0x174   : > { %2171 = vmatprep.subr.bf16.mxu1 %v2293_v1  ;;  %v1969_v13 = vcombine.low %v2774_v45, %v2778_v18  ;;  %v1952_v49 = vcombine.low %v2706_v7, %v2721_v40  ;;  %v1588_v50 = vrot.slane %v1586_v47, 4  ;;  %v1589_v51 = vrot.slane %v2686_v46, 5  ;;  %v2306_v46 = vld [vmem:[%s2868_s3 + $0x98] sm:$0xff]   ;;  %v1790_v8 = vld [vmem:[%s2374_s30 + $0x10] sm:$0xff] }
 0x175   : > { %2163 = vmatprep.mubr.bf16.mxu1 %v1940_v5  ;;  %v1962_v44 = vrot.slane %v1572_v35, 9  ;;  %v1953_v7 = vcombine.low %v2710_v14, %v2727_v48  ;;  %v2308_v14 = vld [vmem:[%s2868_s3 + $0xa8] sm:$0xff]   ;;  %v2309_v48 = vld [vmem:[%s2868_s3 + $0xb0] sm:$0xff]   ;;  %v1600_v36 = vrot.slane %v2721_v40, 5  ;;  %v1603_v59 = vrot.slane %v2723_v41, 5 }
 0x176   : > { %2164 = vmatmul.mubr.bf16.gmra.mrb[4].mxu1 %v1941_v26  ;;  %v1590_v62 = vsel %vm2573_vm14, %v1588_v50, %v1589_v51  ;;  %v1964_v39 = vrot.slane %v1574_v56, 9  ;;  %v1978_v41 = vld [vmem:[%s2869_s4] ss:$0 sm:$0xff]  ;;  %v1789_v5 = vld [vmem:[%s2374_s30 + $0x8] sm:$0xff] }
 0x177   : > { %2172 = vmatpush3.bf16.msra.mxu1 %v2293_v1  ;;  %2183 = vmatprep.mubr.bf16.mxu1 %v1950_v32  ;;  %v1587_v52 = vsel %vm2573_vm14, %v1962_v44, %v1586_v47  ;;  %v1602_v55 = vrot.slane %v1600_v36, 4 }
 0x178   : > { %2173 = vmatprep.subr.bf16.mxu1 %v2295_v58  ;;  %v1966_v53 = vcombine.low %v1587_v52, %v1590_v62  ;;  %v1601_v40 = vsel %vm2573_vm14, %v1964_v39, %v1600_v36 }
 0x179   : > { %v1604_v60 = vsel %vm2573_vm14, %v1602_v55, %v1603_v59 }
 0x17a   : > { %v1968_v61 = vcombine.low %v1601_v40, %v1604_v60 }
 0x17b   : > { %2174 = vmatpush3.bf16.msra.mxu1 %v2295_v58 }
 0x17c   : > { %2175 = vmatprep.subr.bf16.mxu1 %v2296_v34 }
 0x17f   : > { %2176 = vmatpush3.bf16.msra.mxu1 %v2296_v34  ;;  %v1794_v34 = vld [vmem:[%s2374_s30 + $0x30] sm:$0xff] }
 0x180   : > { %2177 = vmatprep.subr.bf16.mxu1 %v2297_v37 }
 0x183   : > { %2178 = vmatpush3.bf16.msra.mxu1 %v2297_v37  ;;  %v1793_v37 = vld [vmem:[%s2374_s30 + $0x28] sm:$0xff] }
 0x184   : > { %2179 = vmatprep.subr.bf16.mxu1 %v2298_v38 }
 0x187   : > { %2180 = vmatpush3.bf16.msra.mxu1 %v2298_v38 }
 0x188   : > { %2181 = vmatprep.subr.bf16.mxu1 %v2299_v42 }
 0x18b   : > { %2182 = vmatpush3.bf16.msra.mxu1 %v2299_v42  ;;  %v1795_v42 = vld [vmem:[%s2374_s30 + $0x38] sm:$0xff] }
 0x18c   : > { %2191 = vmatprep.subr.bf16.mxu1 %v2301_v43 }
 0x18e   : > { %2184 = vmatmul.mubr.bf16.vlgmr.msra.gmra.mrb[0].mxu1 %v1951_v11 }
 0x18f   : > { %2187 = vmatprep.mubr.bf16.mxu1 %v1952_v49  ;;  %2192 = vmatpush3.bf16.msra.mxu1 %v2301_v43 }
 0x190   : > { %2193 = vmatprep.subr.bf16.mxu1 %v2303_v33 }
 0x193   : > { %2194 = vmatpush3.bf16.msra.mxu1 %v2303_v33 }
 0x194   : > { %2195 = vmatprep.subr.bf16.mxu1 %v2305_v29 }
 0x196   : > { %2188 = vmatmul.mubr.bf16.gmra.mrb[4].mxu1 %v1953_v7 }
 0x197   : > { %2196 = vmatpush3.bf16.msra.mxu1 %v2305_v29  ;;  %2207 = vmatprep.mubr.bf16.mxu1 %v1966_v53 }
 0x198   : > { %2197 = vmatprep.subr.bf16.mxu1 %v2306_v46 }
 0x19b   : > { %2198 = vmatpush3.bf16.msra.mxu1 %v2306_v46 }
 0x19c   : > { %2199 = vmatprep.subr.bf16.mxu1 %v2307_v9 }
 0x19f   : > { %2200 = vmatpush3.bf16.msra.mxu1 %v2307_v9 }
 0x1a0   : > { %2201 = vmatprep.subr.bf16.mxu1 %v2308_v14 }
 0x1a3   : > { %2202 = vmatpush3.bf16.msra.mxu1 %v2308_v14 }
 0x1a4   : > { %2203 = vmatprep.subr.bf16.mxu1 %v2309_v48 }
 0x1a7   : > { %2204 = vmatpush3.bf16.msra.mxu1 %v2309_v48 }
 0x1a8   : > { %2205 = vmatprep.subr.bf16.mxu1 %v2310_v54 }
 0x1ab   : > { %2206 = vmatpush3.bf16.msra.mxu1 %v2310_v54 }
 0x1ae   : > { %2208 = vmatmul.mubr.bf16.vlgmr.msra.gmra.mrb[0].mxu1 %v1967_v25 }
 0x1af   : > { %2211 = vmatprep.mubr.bf16.mxu1 %v1968_v61 }
 0x1b6   : > { %2212 = vmatmul.mubr.bf16.gmra.mrb[4].mxu1 %v1969_v13 }
 0x281   : > { %v2209_v57 = vpop.f32.mrb[0].mxu1 }
 0x282   : > { %v1774_v63 = vadd.f32 %v2209_v57, %v1978_v41  ;;  %v1726_v0 = vpop.f32.mrb[1].mxu1 }
 0x283   : > { %v1772_v17 = vadd.f32 %v1978_v41, %v1726_v0  ;;  %v2210_v1 = vpop.f32.mrb[2].mxu1 }
 0x284   : > { %v1782_v2 = vmax.f32 %v1774_v63, 0.0  ;;  %v1775_v4 = vadd.f32 %v2210_v1, %v1978_v41  ;;  %v1729_v6 = vpop.f32.mrb[3].mxu1 }
 0x285   : > { %v1780_v12 = vmax.f32 %v1772_v17, 0.0  ;;  %v1773_v16 = vadd.f32 %v1978_v41, %v1729_v6 }
 0x286   : > { %v1783_v27 = vmax.f32 %v1775_v4, 0.0  ;;  %v1798_v58 = vadd.f32 %v1790_v8, %v1782_v2 }
 0x287   : > { %v1796_v15 = vadd.f32 %v1788_v3, %v1780_v12  ;;  %v1781_v20 = vmax.f32 %v1773_v16, 0.0 }
 0x288   : > { %1806 = vst [vmem:[%s2846_s19 + $0x10] sm:$0xff] %v1798_v58  ;;  %v1799_v10 = vadd.f32 %v1791_v19, %v1783_v27 }
 0x289   : > { %1804 = vst [vmem:[%s2846_s19] sm:$0xff] %v1796_v15  ;;  %v1797_v21 = vadd.f32 %v1789_v5, %v1781_v20  ;;  %v2213_v22 = vpop.f32.mrb[4].mxu1 }
 0x28a   : > { %v1778_v23 = vadd.f32 %v2213_v22, %v1978_v41  ;;  %v1742_v24 = vpop.f32.mrb[5].mxu1  ;;  %1807 = vst [vmem:[%s2846_s19 + $0x18] sm:$0xff] %v1799_v10 }
 0x28b   : > { %1805 = vst [vmem:[%s2846_s19 + $0x8] sm:$0xff] %v1797_v21  ;;  %v1776_v25 = vadd.f32 %v1978_v41, %v1742_v24  ;;  %v2214_v26 = vpop.f32.mrb[6].mxu1 }
 0x28c   : > { %v1786_v28 = vmax.f32 %v1778_v23, 0.0  ;;  %v1779_v31 = vadd.f32 %v2214_v26, %v1978_v41  ;;  %v1745_v32 = vpop.f32.mrb[7].mxu1 }
 0x28d   : > { %v1784_v45 = vmax.f32 %v1776_v25, 0.0  ;;  %v1777_v18 = vadd.f32 %v1978_v41, %v1745_v32 }
 0x28e   : > { %v1787_v13 = vmax.f32 %v1779_v31, 0.0  ;;  %v1802_v47 = vadd.f32 %v1794_v34, %v1786_v28 }
 0x28f   : > { %v1800_v38 = vadd.f32 %v1792_v30, %v1784_v45  ;;  %v1785_v43 = vmax.f32 %v1777_v18, 0.0 }
 0x290   : > { %1810 = vst [vmem:[%s2846_s19 + $0x30] sm:$0xff] %v1802_v47  ;;  %v1803_v33 = vadd.f32 %v1795_v42, %v1787_v13 }
 0x291   : > { %1808 = vst [vmem:[%s2846_s19 + $0x20] sm:$0xff] %v1800_v38  ;;  %v1801_v11 = vadd.f32 %v1793_v37, %v1785_v43 }
 0x292   : > { %1811 = vst [vmem:[%s2846_s19 + $0x38] sm:$0xff] %v1803_v33 }
 0x293   : > { %1809 = vst [vmem:[%s2846_s19 + $0x28] sm:$0xff] %v1801_v11 }
 0x294 PF: > { %s15_s18 = sadd.s32 1, %s2317_s18  }
 0x295   : > { %p12_p4 = scmp.ge.s32.totalorder %s15_s18, 4  }
 0x297   :  { %14 = sbr.rel (!%p12_p4) target bundleno = 1 (0x1), region = 70 }

</bundles_post_ra>
